<compile_context>
chip_gen: v5e
topology: v5e:2x2
jax: 0.10.0
libtpu: 0.0.40
codegen_flags: <defaults>
</compile_context>

<pallas_src>
import functools

import jax
import jax.numpy as jnp
from jax.experimental import pallas as pl
from jax.experimental.pallas import tpu as pltpu

IGNORE_LABEL = 255.0  # cfg.DATASET.IGNORE_LABEL


def _pick_tiling(hw, c, itemsize, batch, target_bytes=4 << 20, min_parallel=4):
    """Choose (tile_hw, hw_padded).

    tile_hw is a multiple of 128 dividing hw_padded >= hw such that
      * each (C, tile_hw) slab of the wider input is ~<= target_bytes, and
      * batch * n_tiles >= min_parallel when the image is big enough, so the
        grid has independent work for megacore / the pipeline even at B=1.
    Padding (hw_padded - hw) is kept as small as the 128-lane constraint allows.
    """
    lane = 128
    hw128 = -(-hw // lane) * lane
    # cap from the per-tile VMEM budget
    t_cap = max(lane, (target_bytes // max(1, c * itemsize)) // lane * lane)
    # cap so batch * n_tiles >= min_parallel (when possible)
    want_tiles = max(1, -(-min_parallel // max(1, batch)))
    t_par = max(lane, (hw128 // want_tiles) // lane * lane)
    t_hi = min(t_cap, t_par, hw128)
    if t_hi >= hw128:
        return hw128, hw128
    # search [t_hi/2, t_hi] (multiples of 128) for the tile with least padding
    best_t = t_hi
    best_pad = -(-hw // t_hi) * t_hi
    t = t_hi - lane
    t_lo = max(lane, t_hi // 2)
    while t >= t_lo and best_pad > hw128:
        pad = -(-hw // t) * t
        if pad < best_pad:
            best_t, best_pad = t, pad
        t -= lane
    return best_t, best_pad


def _bce_partial_kernel(x_ref, t_ref, out_ref, *, ignore_label):
    """One grid step = one (C, TILE_HW) slab of one batch element.

    x_ref, t_ref : VMEM blocks (1, C, TILE_HW), native dtype
    out_ref      : VMEM block  (1, 1, 8, 128) f32 — rows 0..3 hold the four
                   per-(b, tile) partials (S1, S2, count_pos, count_neg).
    """
    # Cast on the VMEM tile (inputs arrive in native dtype; 255 is exactly
    # representable in uint8 / bf16 / f32 so the post-cast compare is exact).
    x = x_ref[0].astype(jnp.float32)          # (C, T)
    t = t_ref[0].astype(jnp.float32)          # (C, T)

    # class-agnostic per-pixel max over channels (raw values, incl. 255 at
    # ignore pixels, which then count in neither pos nor neg — matches ref).
    class_agn = jnp.max(t, axis=0, keepdims=True)                    # (1, T)
    count_pos = jnp.sum((class_agn == 1.0).astype(jnp.float32))
    count_neg = jnp.sum((class_agn == 0.0).astype(jnp.float32))

    mask = (t != ignore_label).astype(jnp.float32)
    t0 = t * mask                                                    # == masked target

    # numerically-stable BCE-with-logits:  max(x,0) - x*t + log1p(exp(-|x|))
    bce = jnp.maximum(x, 0.0) - x * t0 + jnp.log1p(jnp.exp(-jnp.abs(x)))

    # sum(w*bce) == (1-beta)*sum(mask*bce) + (2*beta-1)*sum(t0*bce); beta needs
    # full-image counts, so only the partial sums leave the kernel.
    s1 = jnp.sum(mask * bce)
    s2 = jnp.sum(t0 * bce)

    row = jax.lax.broadcasted_iota(jnp.int32, (8, 128), 0)
    vals = jnp.where(row == 0, s1,
           jnp.where(row == 1, s2,
           jnp.where(row == 2, count_pos, count_neg)))
    out_ref[...] = vals[None, None].astype(out_ref.dtype)


def multichannel_bce_single(logits, target, ignore_label=IGNORE_LABEL,
                            target_bytes=4 << 20):
    """forward_simple: scalar loss (sum-reduced weighted BCE / batch_size)."""
    B, C, H, W = logits.shape
    HW = H * W
    # reshape only (contiguous, free); NO dtype cast in the wrapper.
    x3 = logits.reshape(B, C, HW)
    t3 = target.reshape(B, C, HW)

    x_item = jnp.dtype(x3.dtype).itemsize
    t_item = jnp.dtype(t3.dtype).itemsize
    tile_hw, hw_pad = _pick_tiling(HW, C, max(x_item, t_item), B, target_bytes)

    if hw_pad != HW:
        # Pad with ignore_label (targets) / 0 (logits): numerically a no-op
        # (mask=0, t0=0, class_agn=ignore -> counts in neither pos nor neg).
        pad = hw_pad - HW
        x3 = jnp.concatenate(
            [x3, jnp.zeros((B, C, pad), dtype=x3.dtype)], axis=-1)
        t3 = jnp.concatenate(
            [t3, jnp.full((B, C, pad), ignore_label, dtype=t3.dtype)], axis=-1)
    n_tiles = hw_pad // tile_hw

    kernel = functools.partial(_bce_partial_kernel,
                               ignore_label=float(ignore_label))

    # explicit scoped-VMEM budget: double-buffered inputs + margin, capped so
    # it also fits v7x's 64 MiB physical VMEM.
    in_bytes = C * tile_hw * (x_item + t_item)
    vmem_limit = int(min(48 << 20, max(2 * in_bytes + (4 << 20), 32 << 20)))

    parts = pl.pallas_call(
        kernel,
        grid=(B, n_tiles),
        in_specs=[
            pl.BlockSpec((1, C, tile_hw), lambda b, j: (b, 0, j)),
            pl.BlockSpec((1, C, tile_hw), lambda b, j: (b, 0, j)),
        ],
        out_specs=pl.BlockSpec((1, 1, 8, 128), lambda b, j: (b, j, 0, 0)),
        out_shape=jax.ShapeDtypeStruct((B, n_tiles, 8, 128), jnp.float32),
        compiler_params=pltpu.CompilerParams(
            # no cross-step state -> both grid axes shard freely across cores
            dimension_semantics=("parallel", "parallel"),
            vmem_limit_bytes=vmem_limit,
        ),
    )(x3, t3)

    parts = parts[:, :, :, 0]                 # (B, n_tiles, 8)
    s1 = jnp.sum(parts[:, :, 0], axis=1)      # sum(mask * bce)   per b
    s2 = jnp.sum(parts[:, :, 1], axis=1)      # sum(t0 * bce)     per b
    cp = jnp.sum(parts[:, :, 2], axis=1)      # count_pos         per b
    cn = jnp.sum(parts[:, :, 3], axis=1)      # count_neg         per b

    beta = cn / (cp + cn + 1e-8)                              # use_beta=True
    loss_b = (1.0 - beta) * s1 + (2.0 * beta - 1.0) * s2      # reduction='sum'
    # TODO(synk): only the default config (use_beta/reduce/divide_by_N=True,
    # size_average/sum_by_non_zero_weights=False, no return_raw_cost) is implemented.
    return jnp.sum(loss_b) / jnp.float32(B)                   # divide_by_N


def multichannel_bce_forward(inputs, targets, inputs_weights,
                             ignore_label=IGNORE_LABEL):
    """forward: weighted sum of per-scale losses (weights are python floats)."""
    losses = jnp.float32(0.0)
    for _input, _target, _weight in zip(inputs, targets, inputs_weights):
        if _weight != 0.0:
            losses = losses + jnp.float32(_weight) * multichannel_bce_single(
                _input, _target, ignore_label
            )
    return losses


# ------------------------- pure-JAX reference ------------------------------
def _ref_forward_simple(x, t, ignore_label=IGNORE_LABEL):
    B = t.shape[0]
    x = x.astype(jnp.float32)
    t = t.astype(jnp.float32)
    class_agn = jnp.max(t, axis=1).reshape(B, -1)
    count_pos = jnp.sum(class_agn == 1.0, axis=1).astype(jnp.float32)
    count_neg = jnp.sum(class_agn == 0.0, axis=1).astype(jnp.float32)
    beta = count_neg / (count_pos + count_neg + 1e-8)
    tf = t.reshape(B, -1)
    xf = x.reshape(B, -1)
    mask = jnp.where(tf == ignore_label, 0.0, 1.0)
    t0 = jnp.where(tf == ignore_label, 0.0, tf)
    w = (1.0 - beta[:, None] + (2.0 * beta[:, None] - 1.0) * t0) * mask
    bce = jnp.maximum(xf, 0.0) - xf * t0 + jnp.log1p(jnp.exp(-jnp.abs(xf)))
    return jnp.sum(w * bce) / B


def _ref_forward(inputs, targets, weights, ignore_label=IGNORE_LABEL):
    out = jnp.float32(0.0)
    for x, t, w in zip(inputs, targets, weights):
        if w != 0.0:
            out = out + w * _ref_forward_simple(x, t, ignore_label)
    return out


# --------------------------------- main ------------------------------------
if __name__ == "__main__":
    key = jax.random.PRNGKey(0)

    # three scales: f32/f32 (aligned), bf16 logits + uint8 targets with a
    # non-128-aligned HW (exercises padding + in-kernel casts), and a skipped
    # zero-weight scale.
    shapes = [(2, 4, 16, 16), (2, 4, 16, 18), (2, 4, 16, 16)]
    dtypes = [(jnp.float32, jnp.float32),
              (jnp.bfloat16, jnp.uint8),
              (jnp.float32, jnp.float32)]
    inputs_weights = [1.0, 0.4, 0.0]

    inputs, targets = [], []
    for shape, (x_dt, t_dt) in zip(shapes, dtypes):
        key, k_x, k_t, k_ign = jax.random.split(key, 4)
        logits = jax.random.normal(k_x, shape, dtype=jnp.float32).astype(x_dt)
        tgt = jax.random.bernoulli(k_t, p=0.3, shape=shape).astype(jnp.float32)
        # sprinkle some ignore_label pixels
        ign = jax.random.bernoulli(k_ign, p=0.05, shape=shape)
        tgt = jnp.where(ign, jnp.float32(IGNORE_LABEL), tgt).astype(t_dt)
        inputs.append(logits)
        targets.append(tgt)

    loss = multichannel_bce_forward(inputs, targets, inputs_weights)
    loss = jax.block_until_ready(loss)

    ref = jax.block_until_ready(_ref_forward(inputs, targets, inputs_weights))
    assert jnp.allclose(loss, ref, rtol=1e-5, atol=1e-5), (loss, ref)

    print("KERNEL_OK")
</pallas_src>

<mosaic_0001>
module attributes {stable_mosaic.version = 11 : i64} {
  func.func @_bce_partial_kernel(%arg0: i32, %arg1: i32, %arg2: memref<1x4x128xf32, #tpu.memory_space<vmem>>, %arg3: memref<1x4x128xf32, #tpu.memory_space<vmem>>, %arg4: memref<1x1x8x128xf32, #tpu.memory_space<vmem>>) attributes {dimension_semantics = [#tpu.dimension_semantics<parallel>, #tpu.dimension_semantics<parallel>], iteration_bounds = array<i64: 2, 2>, scalar_prefetch = 0 : i64, scratch_operands = 0 : i64, tpu.core_type = #tpu.core_type<tc>, window_params = [{transform_indices = @transform_0, window_bounds = array<i64: 1, 4, 128>}, {transform_indices = @transform_1, window_bounds = array<i64: 1, 4, 128>}, {transform_indices = @transform_2, window_bounds = array<i64: 1, 1, 8, 128>}]} {
    %c0 = arith.constant 0 : index
    %c0_0 = arith.constant 0 : index
    %c0_1 = arith.constant 0 : index
    %0 = vector.load %arg2[%c0, %c0_0, %c0_1] : memref<1x4x128xf32, #tpu.memory_space<vmem>>, vector<1x4x128xf32>
    %1 = vector.shape_cast %0 : vector<1x4x128xf32> to vector<4x128xf32>
    %c0_2 = arith.constant 0 : index
    %c0_3 = arith.constant 0 : index
    %c0_4 = arith.constant 0 : index
    %2 = vector.load %arg3[%c0_2, %c0_3, %c0_4] : memref<1x4x128xf32, #tpu.memory_space<vmem>>, vector<1x4x128xf32>
    %3 = vector.shape_cast %2 : vector<1x4x128xf32> to vector<4x128xf32>
    %cst = arith.constant dense<0xFF800000> : vector<128xf32>
    %4 = vector.multi_reduction <maximumf>, %3, %cst [0] : vector<4x128xf32> to vector<128xf32>
    %5 = vector.shape_cast %4 : vector<128xf32> to vector<1x128xf32>
    %cst_5 = arith.constant 1.000000e+00 : f32
    %6 = vector.broadcast %cst_5 : f32 to vector<1x128xf32>
    %7 = arith.cmpf oeq, %5, %6 : vector<1x128xf32>
    %8 = arith.extui %7 : vector<1x128xi1> to vector<1x128xi32>
    %9 = arith.sitofp %8 : vector<1x128xi32> to vector<1x128xf32>
    %10 = vector.shape_cast %9 : vector<1x128xf32> to vector<1x1x128xf32>
    %cst_6 = arith.constant dense<0.000000e+00> : vector<1xf32>
    %11 = vector.multi_reduction <add>, %10, %cst_6 [1, 2] : vector<1x1x128xf32> to vector<1xf32>
    %12 = vector.shape_cast %11 : vector<1xf32> to vector<1x1x1xf32>
    %13 = vector.extract %12[0, 0, 0] : f32 from vector<1x1x1xf32>
    %cst_7 = arith.constant 0.000000e+00 : f32
    %14 = vector.broadcast %cst_7 : f32 to vector<1x128xf32>
    %15 = arith.cmpf oeq, %5, %14 : vector<1x128xf32>
    %16 = arith.extui %15 : vector<1x128xi1> to vector<1x128xi32>
    %17 = arith.sitofp %16 : vector<1x128xi32> to vector<1x128xf32>
    %18 = vector.shape_cast %17 : vector<1x128xf32> to vector<1x1x128xf32>
    %cst_8 = arith.constant dense<0.000000e+00> : vector<1xf32>
    %19 = vector.multi_reduction <add>, %18, %cst_8 [1, 2] : vector<1x1x128xf32> to vector<1xf32>
    %20 = vector.shape_cast %19 : vector<1xf32> to vector<1x1x1xf32>
    %21 = vector.extract %20[0, 0, 0] : f32 from vector<1x1x1xf32>
    %cst_9 = arith.constant 2.550000e+02 : f32
    %22 = vector.broadcast %cst_9 : f32 to vector<4x128xf32>
    %23 = arith.cmpf one, %3, %22 : vector<4x128xf32>
    %24 = arith.extui %23 : vector<4x128xi1> to vector<4x128xi32>
    %25 = arith.sitofp %24 : vector<4x128xi32> to vector<4x128xf32>
    %26 = arith.mulf %3, %25 : vector<4x128xf32>
    %cst_10 = arith.constant 0.000000e+00 : f32
    %27 = vector.broadcast %cst_10 : f32 to vector<4x128xf32>
    %28 = arith.maximumf %1, %27 : vector<4x128xf32>
    %29 = arith.mulf %1, %26 : vector<4x128xf32>
    %30 = arith.subf %28, %29 : vector<4x128xf32>
    %31 = math.absf %1 : vector<4x128xf32>
    %cst_11 = arith.constant 0.000000e+00 : f32
    %32 = vector.broadcast %cst_11 : f32 to vector<4x128xf32>
    %33 = arith.subf %32, %31 : vector<4x128xf32>
    %34 = math.exp %33 : vector<4x128xf32>
    %35 = math.log1p %34 : vector<4x128xf32>
    %36 = arith.addf %30, %35 : vector<4x128xf32>
    %37 = arith.mulf %25, %36 : vector<4x128xf32>
    %38 = vector.shape_cast %37 : vector<4x128xf32> to vector<1x4x128xf32>
    %cst_12 = arith.constant dense<0.000000e+00> : vector<1xf32>
    %39 = vector.multi_reduction <add>, %38, %cst_12 [1, 2] : vector<1x4x128xf32> to vector<1xf32>
    %40 = vector.shape_cast %39 : vector<1xf32> to vector<1x1x1xf32>
    %41 = vector.extract %40[0, 0, 0] : f32 from vector<1x1x1xf32>
    %42 = arith.mulf %26, %36 : vector<4x128xf32>
    %43 = vector.shape_cast %42 : vector<4x128xf32> to vector<1x4x128xf32>
    %cst_13 = arith.constant dense<0.000000e+00> : vector<1xf32>
    %44 = vector.multi_reduction <add>, %43, %cst_13 [1, 2] : vector<1x4x128xf32> to vector<1xf32>
    %45 = vector.shape_cast %44 : vector<1xf32> to vector<1x1x1xf32>
    %46 = vector.extract %45[0, 0, 0] : f32 from vector<1x1x1xf32>
    %47 = tpu.iota {dimensions = array<i32: 0>} : vector<8x128xi32>
    %c0_i32 = arith.constant 0 : i32
    %48 = vector.broadcast %c0_i32 : i32 to vector<8x128xi32>
    %49 = arith.cmpi eq, %47, %48 : vector<8x128xi32>
    %c1_i32 = arith.constant 1 : i32
    %50 = vector.broadcast %c1_i32 : i32 to vector<8x128xi32>
    %51 = arith.cmpi eq, %47, %50 : vector<8x128xi32>
    %c2_i32 = arith.constant 2 : i32
    %52 = vector.broadcast %c2_i32 : i32 to vector<8x128xi32>
    %53 = arith.cmpi eq, %47, %52 : vector<8x128xi32>
    %54 = vector.broadcast %13 : f32 to vector<8x128xf32>
    %55 = vector.broadcast %21 : f32 to vector<8x128xf32>
    %56 = arith.select %53, %54, %55 : vector<8x128xi1>, vector<8x128xf32>
    %57 = vector.broadcast %46 : f32 to vector<8x128xf32>
    %58 = arith.select %51, %57, %56 : vector<8x128xi1>, vector<8x128xf32>
    %59 = vector.broadcast %41 : f32 to vector<8x128xf32>
    %60 = arith.select %49, %59, %58 : vector<8x128xi1>, vector<8x128xf32>
    %61 = vector.shape_cast %60 : vector<8x128xf32> to vector<1x1x8x128xf32>
    %c0_14 = arith.constant 0 : index
    %c0_15 = arith.constant 0 : index
    %c0_16 = arith.constant 0 : index
    %c0_17 = arith.constant 0 : index
    %62 = vector.load %arg4[%c0_14, %c0_15, %c0_16, %c0_17] : memref<1x1x8x128xf32, #tpu.memory_space<vmem>>, vector<1x1x8x128xf32>
    tpu.vector_store %arg4[%c0_14, %c0_15, %c0_16, %c0_17], %61 {strides = array<i32>} : memref<1x1x8x128xf32, #tpu.memory_space<vmem>>, vector<1x1x8x128xf32>,
    return
  }
  func.func @transform_0(%arg0: i32, %arg1: i32) -> (i32, i32, i32) {
    %c0_i32 = arith.constant 0 : i32
    %c0_i32_0 = arith.constant 0 : i32
    return %arg0, %c0_i32, %arg1 : i32, i32, i32
  }
  func.func @transform_1(%arg0: i32, %arg1: i32) -> (i32, i32, i32) {
    %c0_i32 = arith.constant 0 : i32
    %c0_i32_0 = arith.constant 0 : i32
    return %arg0, %c0_i32, %arg1 : i32, i32, i32
  }
  func.func @transform_2(%arg0: i32, %arg1: i32) -> (i32, i32, i32, i32) {
    %c0_i32 = arith.constant 0 : i32
    %c0_i32_0 = arith.constant 0 : i32
    %c0_i32_1 = arith.constant 0 : i32
    return %arg0, %arg1, %c0_i32, %c0_i32_0 : i32, i32, i32, i32
  }
}

</mosaic_0001>

<bundles_post_ra>
// kernel: tpu_custom_call.1
= control target key start
LH: loop header
LB: loop body
LE: loop exit
PB: predicated region body
PF: predicated region fallthrough
CT: control target
= control target key end

     0   :  { %s905_s0 = inlined_call_operand.hbm [shape: f32[2,4,256], index: 0, kind: input, shape index: {}]   ;;  %s906_s1 = inlined_call_operand.hbm [shape: f32[2,4,256], index: 1, kind: input, shape index: {}]   ;;  %s907_s2 = inlined_call_operand.hbm [shape: f32[2,2,8,128], index: 2, kind: output, shape index: {}]  }
   0x1   :  { %908 = sst [smem:[#allocation11_spill]] %s905_s0 }
   0x2   :  { %7 = vsyncpa [#allocation3], 0 }
   0x3   :  { %9 = vsyncpa [#allocation3 + $0x1], 0 }
   0x4   :  { %10 = vsyncpa [#allocation6], 0 }
   0x5   :  { %12 = vsyncpa [#allocation6 + $0x1], 0 }
   0x6   :  { %13 = vsyncpa [#allocation4], 0 }
   0x7   :  { %15 = vsyncpa [#allocation4 + $0x1], 0  ;;  %s741_s9 = smov 0   ;;  %s743_s10 = smov 0  }
   0x8   :  { %s745_s11 = smov 0   ;;  %s747_s12 = smov 0  }
   0x9   :  { %s749_s13 = smov 0   ;;  %s751_s14 = smov 0  }
   0xa   :  { %s753_s15 = smov 0   ;;  %s755_s16 = smov 0  }
   0xb LB: > { %s443_s17 = sadd.s32 4294967295, %s723_s16   ;;  %s444_s18 = sadd.s32 4294967294, %s723_s16   ;;  %s723_s16 = sphi %s755_s16, %s21_s16   ;;  %s719_s15 = sphi %s753_s15, %s921_s15   ;;  %s715_s14 = sphi %s751_s14, %s920_s14   ;;  %s711_s13 = sphi %s749_s13, %s919_s13   ;;  %s707_s12 = sphi %s747_s12, %s918_s12   ;;  %s703_s11 = sphi %s745_s11, %s917_s11   ;;  %s699_s10 = sphi %s743_s10, %s916_s10   ;;  %s695_s9 = sphi %s741_s9, %s915_s9  }
   0xc   : > { %s30_s19 = sadd.s32 1, %s715_s14  ;;  %s33_s20 = sadd.s32 1, %s719_s15 }
   0xd   : > { %p31_p0 = scmp.ge.s32.totalorder %s30_s19, 2  ;;  %s42_s21 = sadd.s32 1, %s703_s11 }
   0xe   : > { %p49_p1 = scmp.ne.s32.totalorder %s703_s11, %s699_s10  ;;  %p50_p2 = scmp.eq.s32.totalorder %s723_s16, 0 }
   0xf   : > { %s923_s19 = smov (%p31_p0, %s30_s19), 0  ;;  %s925_s20 = smov (!%p31_p0, %s33_s20), %s719_s15 }
  0x10   : > { %s38_s22 = ssub.s32 %s715_s14, %s923_s19  ;;  %p794_p3 = por %p50_p2, %p49_p1 }
  0x11   : > { %p35_p4 = scmp.ge.s32.totalorder %s925_s20, 2  ;;  %p55_p5 = scmp.ne.s32.totalorder %s699_s10, %s695_s9 }
  0x12   : > { %p56_p6 = scmp.eq.s32.totalorder %s443_s17, 0  ;;  %p109_p7 = scmp.eq.s32.totalorder %s443_s17, 3 }
  0x13   : > { %s927_s20 = smov (%p35_p4, %s925_s20), 0  ;;  %p115_p10 = scmp.eq.s32.totalorder %s444_s18, 3 }
  0x14   : > { %p802_p8 = por %p56_p6, %p55_p5  ;;  %p806_p9 = por %p109_p7, %p49_p1 }
  0x15   : > { %s37_s26 = ssub.s32 %s719_s15, %s927_s20  ;;  %p812_p12 = por %p115_p10, %p55_p5 }
  0x16   : > { %s39_s27 = sor.u32 %s38_s22, %s37_s26  ;;  %p490_p13 = scmp.lt.s32.totalorder %s723_s16, 4 }
  0x17   : > { %p40_p11 = scmp.eq.s32.totalorder %s39_s27, 0  ;;  %s135_s29 = sand.u32 1, %s703_s11  }
  0x18   : > { %s447_s3 = sshll.u32 %s135_s29, 2  ;;  %s448_s4 = sshll.u32 %s719_s15, 1 }
  0x19   : > { %s819_s30 = scalar_select %p40_p11, %s703_s11, %s42_s21  }
  0x1a   : > { %s143_s5 = sadd.s32 %s715_s14, %s448_s4  ;;  %s139_s6 = scalar_lea.vmem [#allocation2], %s447_s3 }
  0x1b   : > { %s149_s7 = sshll.u32 %s139_s6, 4  ;;  %s449_s8 = sshll.u32 %s143_s5, 2  ;;  %s150_s7 = int_to_ptr.vmem [resolvable:$true] %s149_s7 }
  0x1c   : > { %s913_s0 = sld [smem:[#allocation11_spill]]  ;;  %p828_p0 = pnand %p490_p13, %p794_p3 }
  0x1d   : > { %p453_p1 = scmp.ge.s32.totalorder %s723_s16, 1  ;;  %s136_s27 = scalar_lea.sflag [#allocation3], %s135_s29 }
  0x1e   : > { %p175_p2 = scmp.lt.s32.totalorder %s723_s16, 5  ;;  %s166_s6 = scalar_lea.hbm %s906_s1, %s449_s8 }
  0x1f   : > { %s168_s17 = sshll.u32 %s166_s6, 4  ;;  %s160_s23 = scalar_lea.vmem [#allocation5], %s447_s3  ;;  %s169_s17 = int_to_ptr.hbm [resolvable:$true] %s168_s17 }
  0x20   : > { %p176_p4 = pnand %p453_p1, %p175_p2  ;;  %s170_s18 = sshll.u32 %s160_s23, 4  ;;  %s171_s18 = int_to_ptr.vmem [resolvable:$true] %s170_s18 }
  0x22   : > { %s145_s22 = scalar_lea.hbm %s913_s0, %s449_s8  ;;  %s157_s0 = scalar_lea.sflag [#allocation6], %s135_s29 }
  0x23   : > { %s147_s21 = sshll.u32 %s145_s22, 4  ;;  %179 = sbr.rel (%p176_p4) target bundleno = 267 (0x10b), region = 28  ;;  %s148_s21 = int_to_ptr.hbm [resolvable:$true] %s147_s21 }
  0x24   : > { %482 = dma.hbm_to_vmem [thread:$0]  (!%p828_p0), %s148_s21, 64, %s150_s7, %s136_s27  }
  0x25   : > { %485 = dma.hbm_to_vmem [thread:$0]  (!%p828_p0), %s169_s17, 64, %s171_s18, %s157_s0  }
  0x26   : > { %s842_s22 = sand.u32 (!%p176_p4), 1, %s699_s10  }
  0x27   : > { %s454_s7 = sshll.u32 (!%p176_p4), %s842_s22, 2  ;;  %s182_s21 = scalar_lea.sflag (!%p176_p4), [#allocation3], %s842_s22 }
  0x28   : > { %s185_s27 = scalar_lea.vmem [#allocation2], %s454_s7 }
  0x29   : > { %682 = dma.done.wait (%p802_p8), %s182_s21, 64  }
  0x2a   : > { %684 = vsyncadd (%p802_p8), %s182_s21, 4294967232  ;;  %s192_s29 = scalar_lea.sflag [#allocation6], %s842_s22  ;;  %s195_s3 = scalar_lea.vmem [#allocation5], %s454_s7 }
  0x2b   : > { %686 = dma.done.wait (%p802_p8), %s192_s29, 64  }
  0x2c   : > { %688 = vsyncadd (%p802_p8), %s192_s29, 4294967232  ;;  %vm224_vm0 = vcmask 1043456   ;;  %v223_v0 = vld [vmem:[%s195_s3] sm:$0xf]  ;;  %v222_v1 = vld [vmem:[%s185_s27] sm:$0xf] }
  0x2d   : > { %v225_v2 = vsel %vm224_vm0, %v223_v0, -inf  ;;  %v266_v3 = vand.u32 2147483647, %v222_v1  ;;  %vm259_vm1 = vcmp.ne.f32.partialorder %v223_v0, 255.0  ;;  %v725_v11 = vmov 0.0   ;;  %s461_s0 = sshll.u32 %s711_s13, 1 }
  0x2e   : > { %v226_v4 = vrot.slane %v225_v2, 4  ;;  %v459_v12 = vsel %vm259_vm1, 1.0, %v725_v11  ;;  %vm235_vm2 = vcmask 1040384   ;;  %v263_v21 = vmax.f32 %v222_v1, 0.0  ;;  %s326_s24 = sadd.s32 %s707_s12, %s461_s0  ;;  %s456_s8 = sshll.u32 %s842_s22, 3 }
  0x2f   : > { %v267_v5 = vsub.f32 0.0, %v266_v3  ;;  %v262_v15 = vmul.f32 %v459_v12, %v223_v0  ;;  %v302_v0 = vlaneseq  ;;  %s462_s4 = sshll.u32 %s326_s24, 3  ;;  %s221_s18 = scalar_lea.vmem [#allocation7], %s456_s8 }
  0x30   : > { %v227_v6 = vmax.f32 %v225_v2, %v226_v4  ;;  %s328_s23 = scalar_lea.hbm %s907_s2, %s462_s4  ;;  %s330_s7 = sshll.u32 %s221_s18, 4  ;;  %s331_s7 = int_to_ptr.vmem [resolvable:$true] %s330_s7 }
  0x31   : > { %v268_v7 = vmul.f32 1.442695, %v267_v5  ;;  %v264_v22 = vmul.f32 %v262_v15, %v222_v1  ;;  %v303_v1 = vshrl.u32 %v302_v0, 7  ;;  %s332_s13 = sshll.u32 %s328_s23, 4  ;;  %s316_s27 = scalar_lea.sflag [#allocation4], %s842_s22  ;;  %s333_s13 = int_to_ptr.hbm [resolvable:$true] %s332_s13 }
  0x32   : > { %v228_v8 = vrot.slane %v227_v6, 2  ;;  %s635_s29 = sshra.s32 %s333_s13, 4  ;;  %s641_s8 = scalar_lea.hbm %s907_s2, 32  ;;  %s636_s29 = int_to_ptr.hbm [resolvable:$true] %s635_s29 }
  0x33   : > { %557 = vpow2.f32 %v268_v7  ;;  %v265_v28 = vsub.f32 %v263_v21, %v264_v22  ;;  %vm306_vm6 = vcmp.eq.s32.totalorder %v303_v1, 2  ;;  %vm305_vm7 = vcmp.eq.s32.totalorder %v303_v1, 1  ;;  %s637_s3 = scalar_lea.hbm %s636_s29, 8  ;;  %p642_p7 = scmp.lt.s32.totalorder %s636_s29, %s907_s2 }
  0x34   : > { %v229_v9 = vmax.f32 %v227_v6, %v228_v8  ;;  %vm304_vm8 = vcmp.eq.s32.totalorder %v303_v1, 0  ;;  %p638_p3 = scmp.ne.s32.totalorder %s636_s29, %s637_s3  ;;  %p643_p8 = scmp.lt.s32.totalorder %s641_s8, %s637_s3 }
  0x36   : > { %v230_v10 = vrot.slane %v229_v9, 1  ;;  %p639_p5 = pnand %p638_p3, %p806_p9  ;;  %p644_p10 = por %p643_p8, %p642_p7 }
  0x38   : > { %v231_v13 = vmax.f32 %v229_v9, %v230_v10  ;;  %p640_p6 = pneg %p639_p5 }
  0x39   : > { %v558_v14 = vpop.eup %557 }
  0x3a   : > { %vm232_vm3 = vcmp.eq.f32.partialorder %v231_v13, 1.0  ;;  %v270_v16 = vadd.f32 1.0, %v558_v14  ;;  %v273_v17 = vmul.f32 -0.5, %v558_v14  ;;  %vm246_vm4 = vcmp.eq.f32.partialorder %v231_v13, 0.0  ;;  %p645_p11 = pnand %p644_p10, %p640_p6 }
  0x3b   : > { %v457_v18 = vsel %vm232_vm3, 1.0, %v725_v11  ;;  %v276_v23 = vand.u32 2147483647, %v558_v14  ;;  %v458_v24 = vsel %vm246_vm4, 1.0, %v725_v11 }
  0x3c   : > { %v236_v19 = vsel %vm235_vm2, %v457_v18, 0.0  ;;  %559 = vlog2.f32 %v270_v16  ;;  %v274_v20 = vadd.f32 1.0, %v273_v17  ;;  %v249_v27 = vsel %vm235_vm2, %v458_v24, 0.0 }
  0x3d   : > { %237 = vadd.xlane.f32.xlu0 %v236_v19  ;;  %vm277_vm5 = vcmp.lt.f32.partialorder %v276_v23, 0.0004427343 }
  0x3e   : > { %v275_v25 = vmul.f32 %v558_v14, %v274_v20 }
  0x42   : > { %v560_v26 = vpop.eup %559 }
  0x43   : > { %v272_v29 = vmul.f32 0.6931472, %v560_v26 }
  0x45   : > { %250 = vadd.xlane.f32.xlu0 %v249_v27  ;;  %v278_v30 = vsel %vm277_vm5, %v275_v25, %v272_v29 }
  0x46   : > { %v279_v31 = vadd.f32 %v278_v30, %v265_v28 }
  0x48   : > { %v280_v32 = vmul.f32 %v459_v12, %v279_v31  ;;  %v291_v34 = vmul.f32 %v279_v31, %v262_v15 }
  0x4a   : > { %v281_v33 = vsel %vm224_vm0, %v280_v32, 0.0  ;;  %v292_v35 = vsel %vm224_vm0, %v291_v34, 0.0 }
  0x4b   : > { %282 = vadd.xlane.f32.xlu1 %v281_v33 }
  0x53   : > { %293 = vadd.xlane.f32.xlu1 %v292_v35 }
  0xb0   : > { %v238_v36 = vpop.xlane.xlu0 %237 }
  0xb1   : > { %v239_v37 = vrot.slane %v238_v36, 4 }
  0xb3   : > { %v240_v38 = vadd.f32 %v239_v37, %v238_v36 }
  0xb5   : > { %v241_v39 = vrot.slane %v240_v38, 2 }
  0xb7   : > { %v242_v40 = vadd.f32 %v241_v39, %v240_v38 }
  0xb8   : > { %v251_v41 = vpop.xlane.xlu0 %250 }
  0xb9   : > { %v252_v42 = vrot.slane %v251_v41, 4  ;;  %v243_v43 = vrot.slane %v242_v40, 1 }
  0xbb   : > { %v253_v44 = vadd.f32 %v252_v42, %v251_v41  ;;  %v244_v45 = vadd.f32 %v243_v43, %v242_v40 }
  0xbd   : > { %v254_v46 = vrot.slane %v253_v44, 2  ;;  %465 = vpush %v244_v45 }
  0xbe   : > { %v283_v47 = vpop.xlane.xlu1 %282 }
  0xbf   : > { %v255_v48 = vadd.f32 %v254_v46, %v253_v44  ;;  %v284_v49 = vrot.slane %v283_v47, 4 }
  0xc1   : > { %v285_v50 = vadd.f32 %v284_v49, %v283_v47  ;;  %v256_v51 = vrot.slane %v255_v48, 1 }
  0xc3   : > { %v286_v52 = vrot.slane %v285_v50, 2  ;;  %v257_v53 = vadd.f32 %v256_v51, %v255_v48 }
  0xc5   : > { %467 = vpush %v257_v53  ;;  %v287_v54 = vadd.f32 %v286_v52, %v285_v50 }
  0xc6   : > { %v294_v55 = vpop.xlane.xlu1 %293 }
  0xc7   : > { %v295_v56 = vrot.slane %v294_v55, 4  ;;  %v288_v57 = vrot.slane %v287_v54, 1 }
  0xc9   : > { %v296_v58 = vadd.f32 %v295_v56, %v294_v55  ;;  %v289_v59 = vadd.f32 %v288_v57, %v287_v54 }
  0xcb   : > { %v297_v60 = vrot.slane %v296_v58, 2  ;;  %469 = vpush %v289_v59 }
  0xcd   : > { %v298_v61 = vadd.f32 %v297_v60, %v296_v58 }
  0xcf   : > { %v299_v62 = vrot.slane %v298_v61, 1 }
  0xd1   : > { %v300_v63 = vadd.f32 %v299_v62, %v298_v61 }
  0xd3   : > { %471 = vpush %v300_v63 }
  0xee   : > { %s466_s26 = spop %465 }
  0xef   : > { %v307_v2 = vstv %s466_s26 }
  0xf6   : > { %s468_s5 = spop %467 }
  0xf7   : > { %v308_v3 = vstv %s468_s5 }
  0xf8   : > { %v309_v4 = vsel %vm306_vm6, %v307_v2, %v308_v3 }
  0xfc   : > { %s470_s21 = spop %469 }
  0xfd   : > { %v312_v6 = vstv %s470_s21 }
 0x104   : > { %s472_s12 = spop %471 }
 0x105   : > { %v310_v5 = vstv %s472_s12 }
 0x106   : > { %v311_v7 = vsel %vm305_vm7, %v310_v5, %v309_v4 }
 0x107   : > { %v313_v8 = vsel %vm304_vm8, %v312_v6, %v311_v7 }
 0x108   : > { %314 = vst [vmem:[%s221_s18] sm:$0xff] %v313_v8 }
 0x109   : > { %648 = shalt.err (!%p645_p11)
}
 0x10a   : > { %477 = dma.vmem_to_hbm [thread:$0]  (%p806_p9), %s331_s7, 128, %s333_s13, %s316_s27  }
 0x10b PF: > { %p491_p13 = scmp.ge.s32.totalorder %s723_s16, 2  ;;  %s344_s22 = sand.u32 1, %s695_s9  }
 0x10c   : > { %s345_s5 = scalar_lea.sflag [#allocation4], %s344_s22 }
 0x10d   : > { %p487_p0 = pnand %p491_p13, %p812_p12 }
 0x10f   : > { %p488_p1 = pneg %p487_p0 }
 0x111   : > { %690 = dma.done.wait (%p488_p1), %s345_s5, 128  }
 0x112   : > { %692 = vsyncadd (%p488_p1), %s345_s5, 4294967168  ;;  %s21_s16 = sadd.s32 1, %s723_s16   ;;  %s915_s9 = smov %s699_s10 }
 0x113   : > { %p18_p2 = scmp.ge.s32.totalorder %s21_s16, 6   ;;  %s916_s10 = smov %s703_s11 }
 0x114   : > { %s917_s11 = smov %s819_s30  ;;  %s918_s12 = smov %s715_s14 }
 0x115   : > { %s919_s13 = smov %s719_s15  ;;  %s920_s14 = smov %s923_s19 }
 0x116   : > { %s921_s15 = smov %s927_s20  ;;  %20 = sbr.rel (!%p18_p2) target bundleno = 11 (0xb), region = 86 }
 0x11b   :  { %351 = vsyncpa [#allocation3], 1 }
 0x11c   :  { %353 = vsyncpa [#allocation3 + $0x1], 1 }
 0x11d   :  { %354 = vsyncpa [#allocation6], 1 }
 0x11e   :  { %356 = vsyncpa [#allocation6 + $0x1], 1 }
 0x11f   :  { %357 = vsyncpa [#allocation4], 1 }
 0x120   :  { %359 = vsyncpa [#allocation4 + $0x1], 1 }

</bundles_post_ra>
